<compile_context>
chip_gen: v6e
topology: v6e:2x2x1
jax: 0.10.0
libtpu: 0.0.40
codegen_flags: <defaults>
</compile_context>

<pallas_src>
import functools

import jax
import jax.numpy as jnp
from jax.experimental import pallas as pl
from jax.experimental.pallas import tpu as pltpu

LANE = 128   # TPU lane width
SUBLANE = 8  # f32 sublane height; batch tiles are kept 8-aligned


def _round_up(n, m):
    return (n + m - 1) // m * m


def _mlp_kernel(x_ref, w1_ref, b1_ref, w2_ref, b2_ref, w3_ref, b3_ref, o_ref):
    # Cast the f32 input tile to bf16 in-kernel (VPU work hidden under the DMA).
    x = x_ref[...].astype(w1_ref.dtype)
    # fc1 + ReLU  (bf16 operands, f32 accumulation on the MXU; bias added in f32)
    h1 = jnp.dot(x, w1_ref[...], preferred_element_type=jnp.float32)
    h1 = jnp.maximum(h1 + b1_ref[...], 0.0)
    # fc2 + ReLU  (hidden dim padded 64->128 so this runs unmasked/full-lane)
    h2 = jnp.dot(h1.astype(w2_ref.dtype), w2_ref[...],
                 preferred_element_type=jnp.float32)
    h2 = jnp.maximum(h2 + b2_ref[...], 0.0)
    # fc3 (no activation), written unpadded as f32
    h3 = jnp.dot(h2.astype(w3_ref.dtype), w3_ref[...],
                 preferred_element_type=jnp.float32)
    o_ref[...] = (h3 + b3_ref[...]).astype(o_ref.dtype)


def prepare_params(params, compute_dtype=jnp.bfloat16):
    """Hoisted once-per-weight-update prep.

    Transposes torch-layout (out, in) weights to (in, out), pads the 64-wide hidden
    dim to 128 lanes (zero columns of fc2 / zero rows of fc3 — exact zeros after
    ReLU(0+0), so the math is unchanged), and casts weights to the MXU compute dtype.
    Input and output feature dims stay unpadded; biases stay f32 and are added
    post-accumulation.
    """
    w1 = jnp.asarray(params["fc1_w"], jnp.float32).T          # (in, 128)
    w2 = jnp.asarray(params["fc2_w"], jnp.float32).T          # (128, 64)
    w3 = jnp.asarray(params["fc3_w"], jnp.float32).T          # (64, out)
    b1 = jnp.asarray(params["fc1_b"], jnp.float32)[None, :]   # (1, 128)
    b2 = jnp.asarray(params["fc2_b"], jnp.float32)[None, :]   # (1, 64)
    b3 = jnp.asarray(params["fc3_b"], jnp.float32)[None, :]   # (1, out)

    h2_dim = w2.shape[1]
    h2_pad = _round_up(h2_dim, LANE)                           # 64 -> 128
    w2 = jnp.pad(w2, ((0, 0), (0, h2_pad - h2_dim)))
    b2 = jnp.pad(b2, ((0, 0), (0, h2_pad - h2_dim)))
    w3 = jnp.pad(w3, ((0, h2_pad - h2_dim), (0, 0)))

    return {
        "w1": w1.astype(compute_dtype),
        "w2": w2.astype(compute_dtype),
        "w3": w3.astype(compute_dtype),
        "b1": b1,
        "b2": b2,
        "b3": b3,
    }


@functools.partial(jax.jit, static_argnames=("block_b",))
def multi_output_regressor_forward(x, prep, *, block_b=1024):
    """x: (B, input_dim) float32 (unpadded). prep: output of prepare_params()."""
    B, in_dim = x.shape
    w1, w2, w3 = prep["w1"], prep["w2"], prep["w3"]
    b1, b2, b3 = prep["b1"], prep["b2"], prep["b3"]
    assert w1.shape[0] == in_dim, "input_dim mismatch with prepared params"
    h1_dim = w1.shape[1]        # 128
    h2_dim = w2.shape[1]        # 128 (padded from 64)
    out_dim = w3.shape[1]       # real output_dim (unpadded)
    assert block_b % SUBLANE == 0, "block_b must be a multiple of 8"

    # Batch tile: largest tile <= block_b that covers B; split into >=2 grid steps
    # whenever the batch allows, so the "parallel" axis shards across both v7x
    # TensorCores (1-TC v5e/v6e pay only one extra ~0.35us step).
    block_b_eff = min(block_b, _round_up(B, SUBLANE))
    if B >= 2 * SUBLANE and pl.cdiv(B, block_b_eff) < 2:
        block_b_eff = _round_up(pl.cdiv(B, 2), SUBLANE)
    grid = (pl.cdiv(B, block_b_eff),)   # ragged last block handled by Pallas

    full = lambda a: pl.BlockSpec(a.shape, lambda i: (0, 0))   # resident weights/biases

    flops = 2 * B * (in_dim * h1_dim + h1_dim * h2_dim + h2_dim * out_dim)
    weight_bytes = sum(a.size * a.dtype.itemsize for a in (w1, w2, w3, b1, b2, b3))
    bytes_accessed = x.size * x.dtype.itemsize + weight_bytes + B * out_dim * 4

    # Per-step VMEM footprint: double-buffered x/out tiles + (double-buffered) resident
    # weights + f32 h1/h2 intermediates.  Raise the scoped limit only when needed
    # (v5e defaults to 16 MiB); if shapes ever push past ~60 MiB, shrink block_b.
    vmem_est = (
        2 * block_b_eff * (in_dim + out_dim) * 4
        + 2 * weight_bytes
        + 4 * block_b_eff * (h1_dim + h2_dim)
    )
    cparams = {"dimension_semantics": ("parallel",)}
    if vmem_est > (12 << 20):
        cparams["vmem_limit_bytes"] = int(min(2 * vmem_est, 60 << 20))

    out = pl.pallas_call(
        _mlp_kernel,
        out_shape=jax.ShapeDtypeStruct((B, out_dim), jnp.float32),
        grid_spec=pltpu.PrefetchScalarGridSpec(
            num_scalar_prefetch=0,
            grid=grid,
            in_specs=[
                pl.BlockSpec((block_b_eff, in_dim), lambda i: (i, 0)),  # x tile (f32)
                full(w1), full(b1),                                     # fc1 (resident)
                full(w2), full(b2),                                     # fc2 (resident)
                full(w3), full(b3),                                     # fc3 (resident)
            ],
            out_specs=pl.BlockSpec((block_b_eff, out_dim), lambda i: (i, 0)),
        ),
        compiler_params=pltpu.CompilerParams(**cparams),
        cost_estimate=pl.CostEstimate(
            flops=flops, transcendentals=0, bytes_accessed=bytes_accessed),
    )(x, w1, b1, w2, b2, w3, b3)

    return {"pathways_pred": out}


def init_params(key, input_dim, output_dim):
    """Deterministic synthetic parameters with PyTorch nn.Linear layout (out, in)."""
    ks = jax.random.split(key, 6)

    def uniform(k, shape, fan_in):
        bound = 1.0 / jnp.sqrt(fan_in)
        return jax.random.uniform(k, shape, jnp.float32, -bound, bound)

    return {
        "fc1_w": uniform(ks[0], (128, input_dim), input_dim),
        "fc1_b": uniform(ks[1], (128,), input_dim),
        "fc2_w": uniform(ks[2], (64, 128), 128),
        "fc2_b": uniform(ks[3], (64,), 128),
        "fc3_w": uniform(ks[4], (output_dim, 64), 64),
        "fc3_b": uniform(ks[5], (output_dim,), 64),
    }


def _reference_f32(x, params):
    h = jnp.maximum(x @ params["fc1_w"].T + params["fc1_b"], 0.0)
    h = jnp.maximum(h @ params["fc2_w"].T + params["fc2_b"], 0.0)
    return h @ params["fc3_w"].T + params["fc3_b"]


def _reference_bf16(x, params):
    """Same bf16-operand / f32-accumulation recipe as the kernel."""
    bf = jnp.bfloat16
    h = jnp.dot(x.astype(bf), params["fc1_w"].T.astype(bf),
                preferred_element_type=jnp.float32) + params["fc1_b"]
    h = jnp.maximum(h, 0.0)
    h = jnp.dot(h.astype(bf), params["fc2_w"].T.astype(bf),
                preferred_element_type=jnp.float32) + params["fc2_b"]
    h = jnp.maximum(h, 0.0)
    return jnp.dot(h.astype(bf), params["fc3_w"].T.astype(bf),
                   preferred_element_type=jnp.float32) + params["fc3_b"]


if __name__ == "__main__":
    key = jax.random.PRNGKey(0)
    k_x, k_p, k_x2 = jax.random.split(key, 3)

    # Small demo shapes (single grid step).
    batch, input_dim, output_dim = 8, 32, 16
    x = jax.random.normal(k_x, (batch, input_dim), jnp.float32)
    params = init_params(k_p, input_dim, output_dim)
    prep = prepare_params(params)  # hoisted transpose / hidden-dim pad / bf16 cast

    out = multi_output_regressor_forward(x, prep)
    pred = jax.block_until_ready(out["pathways_pred"])
    assert pred.shape == (batch, output_dim)
    assert jnp.allclose(pred, _reference_bf16(x, params), atol=2e-2, rtol=2e-2), \
        "mismatch vs bf16 reference"
    assert jnp.allclose(pred, _reference_f32(x, params), atol=1e-1, rtol=1e-1), \
        "mismatch vs f32 reference"

    # Ragged multi-step grid: block_b=128 -> grid=(2,), last block partial (72 rows).
    batch2 = 200
    x2 = jax.random.normal(k_x2, (batch2, input_dim), jnp.float32)
    out2 = multi_output_regressor_forward(x2, prep, block_b=128)
    pred2 = jax.block_until_ready(out2["pathways_pred"])
    assert pred2.shape == (batch2, output_dim)
    assert jnp.allclose(pred2, _reference_bf16(x2, params), atol=2e-2, rtol=2e-2), \
        "mismatch vs bf16 reference (ragged grid)"

    # Default block_b with a batch that would otherwise be a single step: exercises the
    # forced >=2-step split (v7x dual-TensorCore path), also ragged (tiles of 104).
    out3 = multi_output_regressor_forward(x2, prep)
    pred3 = jax.block_until_ready(out3["pathways_pred"])
    assert pred3.shape == (batch2, output_dim)
    assert jnp.allclose(pred3, _reference_bf16(x2, params), atol=2e-2, rtol=2e-2), \
        "mismatch vs bf16 reference (split grid)"

    print("KERNEL_OK")
</pallas_src>

<mosaic_0001>
module attributes {stable_mosaic.version = 11 : i64} {
  func.func @_mlp_kernel(%arg0: i32, %arg1: memref<8x32xf32, #tpu.memory_space<vmem>>, %arg2: memref<32x128xbf16, #tpu.memory_space<vmem>>, %arg3: memref<1x128xf32, #tpu.memory_space<vmem>>, %arg4: memref<128x128xbf16, #tpu.memory_space<vmem>>, %arg5: memref<1x128xf32, #tpu.memory_space<vmem>>, %arg6: memref<128x16xbf16, #tpu.memory_space<vmem>>, %arg7: memref<1x16xf32, #tpu.memory_space<vmem>>, %arg8: memref<8x16xf32, #tpu.memory_space<vmem>>) attributes {dimension_semantics = [#tpu.dimension_semantics<parallel>], iteration_bounds = array<i64: 1>, scalar_prefetch = 0 : i64, scratch_operands = 0 : i64, tpu.core_type = #tpu.core_type<tc>, window_params = [{transform_indices = @transform_0, window_bounds = array<i64: 8, 32>}, {pipeline_mode = #tpu.pipeline_mode<synchronous>, transform_indices = @transform_1, window_bounds = array<i64: 32, 128>}, {pipeline_mode = #tpu.pipeline_mode<synchronous>, transform_indices = @transform_2, window_bounds = array<i64: 1, 128>}, {pipeline_mode = #tpu.pipeline_mode<synchronous>, transform_indices = @transform_3, window_bounds = array<i64: 128, 128>}, {pipeline_mode = #tpu.pipeline_mode<synchronous>, transform_indices = @transform_4, window_bounds = array<i64: 1, 128>}, {pipeline_mode = #tpu.pipeline_mode<synchronous>, transform_indices = @transform_5, window_bounds = array<i64: 128, 16>}, {pipeline_mode = #tpu.pipeline_mode<synchronous>, transform_indices = @transform_6, window_bounds = array<i64: 1, 16>}, {transform_indices = @transform_7, window_bounds = array<i64: 8, 16>}]} {
    %c0 = arith.constant 0 : index
    %c0_0 = arith.constant 0 : index
    %0 = vector.load %arg1[%c0, %c0_0] : memref<8x32xf32, #tpu.memory_space<vmem>>, vector<8x32xf32>
    %1 = arith.truncf %0 : vector<8x32xf32> to vector<8x32xbf16>
    %c0_1 = arith.constant 0 : index
    %c0_2 = arith.constant 0 : index
    %2 = vector.load %arg2[%c0_1, %c0_2] : memref<32x128xbf16, #tpu.memory_space<vmem>>, vector<32x128xbf16>
    %cst = arith.constant dense<0.000000e+00> : vector<8x128xf32>
    %3 = tpu.matmul %1, %2, %cst {dimension_numbers = #tpu.dot_dimension_numbers<[1], [0], [0], [1], [0, 0, 1, 1], [], []>} : vector<8x32xbf16>, vector<32x128xbf16>, vector<8x128xf32> -> vector<8x128xf32>
    %c0_3 = arith.constant 0 : index
    %c0_4 = arith.constant 0 : index
    %4 = vector.load %arg3[%c0_3, %c0_4] : memref<1x128xf32, #tpu.memory_space<vmem>>, vector<1x128xf32>
    %5 = vector.broadcast %4 : vector<1x128xf32> to vector<8x128xf32>
    %6 = arith.addf %3, %5 : vector<8x128xf32>
    %cst_5 = arith.constant 0.000000e+00 : f32
    %7 = vector.broadcast %cst_5 : f32 to vector<8x128xf32>
    %8 = arith.maximumf %6, %7 : vector<8x128xf32>
    %9 = arith.truncf %8 : vector<8x128xf32> to vector<8x128xbf16>
    %c0_6 = arith.constant 0 : index
    %c0_7 = arith.constant 0 : index
    %10 = vector.load %arg4[%c0_6, %c0_7] : memref<128x128xbf16, #tpu.memory_space<vmem>>, vector<128x128xbf16>
    %cst_8 = arith.constant dense<0.000000e+00> : vector<8x128xf32>
    %11 = tpu.matmul %9, %10, %cst_8 {dimension_numbers = #tpu.dot_dimension_numbers<[1], [0], [0], [1], [0, 0, 1, 1], [], []>} : vector<8x128xbf16>, vector<128x128xbf16>, vector<8x128xf32> -> vector<8x128xf32>
    %c0_9 = arith.constant 0 : index
    %c0_10 = arith.constant 0 : index
    %12 = vector.load %arg5[%c0_9, %c0_10] : memref<1x128xf32, #tpu.memory_space<vmem>>, vector<1x128xf32>
    %13 = vector.broadcast %12 : vector<1x128xf32> to vector<8x128xf32>
    %14 = arith.addf %11, %13 : vector<8x128xf32>
    %cst_11 = arith.constant 0.000000e+00 : f32
    %15 = vector.broadcast %cst_11 : f32 to vector<8x128xf32>
    %16 = arith.maximumf %14, %15 : vector<8x128xf32>
    %17 = arith.truncf %16 : vector<8x128xf32> to vector<8x128xbf16>
    %c0_12 = arith.constant 0 : index
    %c0_13 = arith.constant 0 : index
    %18 = vector.load %arg6[%c0_12, %c0_13] : memref<128x16xbf16, #tpu.memory_space<vmem>>, vector<128x16xbf16>
    %cst_14 = arith.constant dense<0.000000e+00> : vector<8x16xf32>
    %19 = tpu.matmul %17, %18, %cst_14 {dimension_numbers = #tpu.dot_dimension_numbers<[1], [0], [0], [1], [0, 0, 1, 1], [], []>} : vector<8x128xbf16>, vector<128x16xbf16>, vector<8x16xf32> -> vector<8x16xf32>
    %c0_15 = arith.constant 0 : index
    %c0_16 = arith.constant 0 : index
    %20 = vector.load %arg7[%c0_15, %c0_16] : memref<1x16xf32, #tpu.memory_space<vmem>>, vector<1x16xf32>
    %21 = vector.broadcast %20 : vector<1x16xf32> to vector<8x16xf32>
    %22 = arith.addf %19, %21 : vector<8x16xf32>
    %c0_17 = arith.constant 0 : index
    %c0_18 = arith.constant 0 : index
    %23 = vector.load %arg8[%c0_17, %c0_18] : memref<8x16xf32, #tpu.memory_space<vmem>>, vector<8x16xf32>
    tpu.vector_store %arg8[%c0_17, %c0_18], %22 {strides = array<i32>} : memref<8x16xf32, #tpu.memory_space<vmem>>, vector<8x16xf32>,
    return
  }
  func.func @transform_0(%arg0: i32) -> (i32, i32) {
    %c0_i32 = arith.constant 0 : i32
    %c0_i32_0 = arith.constant 0 : i32
    return %arg0, %c0_i32 : i32, i32
  }
  func.func @transform_1(%arg0: i32) -> (i32, i32) {
    %c0_i32 = arith.constant 0 : i32
    %c0_i32_0 = arith.constant 0 : i32
    %c0_i32_1 = arith.constant 0 : i32
    return %c0_i32, %c0_i32_0 : i32, i32
  }
  func.func @transform_2(%arg0: i32) -> (i32, i32) {
    %c0_i32 = arith.constant 0 : i32
    %c0_i32_0 = arith.constant 0 : i32
    %c0_i32_1 = arith.constant 0 : i32
    return %c0_i32, %c0_i32_0 : i32, i32
  }
  func.func @transform_3(%arg0: i32) -> (i32, i32) {
    %c0_i32 = arith.constant 0 : i32
    %c0_i32_0 = arith.constant 0 : i32
    %c0_i32_1 = arith.constant 0 : i32
    return %c0_i32, %c0_i32_0 : i32, i32
  }
  func.func @transform_4(%arg0: i32) -> (i32, i32) {
    %c0_i32 = arith.constant 0 : i32
    %c0_i32_0 = arith.constant 0 : i32
    %c0_i32_1 = arith.constant 0 : i32
    return %c0_i32, %c0_i32_0 : i32, i32
  }
  func.func @transform_5(%arg0: i32) -> (i32, i32) {
    %c0_i32 = arith.constant 0 : i32
    %c0_i32_0 = arith.constant 0 : i32
    %c0_i32_1 = arith.constant 0 : i32
    return %c0_i32, %c0_i32_0 : i32, i32
  }
  func.func @transform_6(%arg0: i32) -> (i32, i32) {
    %c0_i32 = arith.constant 0 : i32
    %c0_i32_0 = arith.constant 0 : i32
    %c0_i32_1 = arith.constant 0 : i32
    return %c0_i32, %c0_i32_0 : i32, i32
  }
  func.func @transform_7(%arg0: i32) -> (i32, i32) {
    %c0_i32 = arith.constant 0 : i32
    %c0_i32_0 = arith.constant 0 : i32
    return %arg0, %c0_i32 : i32, i32
  }
}

</mosaic_0001>

<bundles_post_ra>
// kernel: multi_output_regressor_forward.1
= control target key start
LH: loop header
LB: loop body
LE: loop exit
PB: predicated region body
PF: predicated region fallthrough
CT: control target
= control target key end

     0   :  { %12 = vsyncpa [#allocation3], 0  ;;  %s716_s0 = inlined_call_operand.hbm [shape: f32[8,32], index: 0, kind: input, shape index: {}]   ;;  %s717_s1 = inlined_call_operand.vmem [shape: bf16[32,128], index: 1, kind: input, shape index: {}]   ;;  %s718_s2 = inlined_call_operand.vmem [shape: f32[1,128], index: 2, kind: input, shape index: {}]   ;;  %s719_s3 = inlined_call_operand.vmem [shape: bf16[128,128], index: 3, kind: input, shape index: {}]   ;;  %s720_s4 = inlined_call_operand.hbm [shape: f32[1,128], index: 4, kind: input, shape index: {}]   ;;  %s721_s5 = inlined_call_operand.vmem [shape: bf16[128,16], index: 5, kind: input, shape index: {}]   ;;  %s722_s6 = inlined_call_operand.hbm [shape: f32[1,16], index: 6, kind: input, shape index: {}]   ;;  %s723_s7 = inlined_call_operand.hbm [shape: f32[8,16], index: 7, kind: output, shape index: {}]  }
   0x1   :  { %13 = vsyncpa [#allocation6], 0 }
   0x2   :  { %14 = vsyncpa [#allocation4], 0  ;;  %s577_s24 = smov [#allocation5]   ;;  %s578_s26 = smov [#allocation2]  }
   0x3   :  { %s37_s25 = sshll.u32 %s577_s24, 4  ;;  %s21_s27 = sshll.u32 %s578_s26, 4  ;;  %s38_s25 = int_to_ptr.vmem [resolvable:$true] %s37_s25  ;;  %s22_s27 = int_to_ptr.vmem [resolvable:$true] %s21_s27 }
   0x4   :  { %s499_s28 = scalar_lea.vmem %s38_s25, 16  ;;  %s503_s29 = scalar_lea.vmem %s38_s25, 32 }
   0x5   :  { %p500_p0 = scmp.ne.s32.totalorder %s38_s25, %s499_s28  ;;  %p504_p1 = scmp.lt.s32.totalorder %s38_s25, %s38_s25 }
   0x6   :  { %p505_p2 = scmp.lt.s32.totalorder %s503_s29, %s499_s28 }
   0x8   :  { %p506_p3 = por %p505_p2, %p504_p1 }
   0xa   :  { %p507_p4 = pnand %p506_p3, %p500_p0 }
   0xc   :  { %510 = shalt.err (!%p507_p4)
}
   0xd   :  { %40 = dma.hbm_to_vmem [thread:$0]  %s720_s4, 16, %s38_s25, [#allocation6]  }
   0xe   :  { %s519_s9 = scalar_lea.vmem %s22_s27, 128  ;;  %p524_p6 = scmp.lt.s32.totalorder %s22_s27, %s22_s27 }
   0xf   :  { %p520_p5 = scmp.ne.s32.totalorder %s22_s27, %s519_s9  ;;  %p525_p7 = scmp.lt.s32.totalorder %s519_s9, %s519_s9 }
  0x11   :  { %p526_p8 = por %p525_p7, %p524_p6 }
  0x13   :  { %p527_p9 = pnand %p526_p8, %p520_p5 }
  0x15   :  { %530 = shalt.err (!%p527_p9)
}
  0x16   :  { %24 = dma.hbm_to_vmem [thread:$0]  %s716_s0, 128, %s22_s27, [#allocation3]  }
  0x17   :  { %s579_s12 = smov [#allocation7]  }
  0x18   :  { %s49_s13 = sshll.u32 %s579_s12, 4  ;;  %s50_s13 = int_to_ptr.vmem [resolvable:$true] %s49_s13 }
  0x19   :  { %s539_s14 = scalar_lea.vmem %s50_s13, 16  ;;  %s543_s15 = scalar_lea.vmem %s50_s13, 32 }
  0x1a   :  { %p540_p10 = scmp.ne.s32.totalorder %s50_s13, %s539_s14  ;;  %p544_p11 = scmp.lt.s32.totalorder %s50_s13, %s50_s13 }
  0x1b   :  { %p545_p12 = scmp.lt.s32.totalorder %s543_s15, %s539_s14 }
  0x1d   :  { %p546_p13 = por %p545_p12, %p544_p11 }
  0x1f   :  { %p547_p0 = pnand %p546_p13, %p540_p10 }
  0x21   :  { %550 = shalt.err (!%p547_p0)
}
  0x22   :  { %52 = dma.hbm_to_vmem [thread:$0]  %s722_s6, 16, %s50_s13, [#allocation6]  }
  0x23   :  { %571 = dma.done.wait [#allocation3], 128  }
  0x24   :  { %572 = vsyncadd [#allocation3], 4294967168 }
  0x25   :  { %573 = dma.done.wait [#allocation6], 32  }
  0x26   :  { %574 = vsyncadd [#allocation6], 4294967264  ;;  %v580_v0 = vmov 0.0   ;;  %vm581_vm0 = vmmov 0   ;;  %v473_v1 = vld [vmem:[%s717_s1 + $0x8] sm:$0xff]   ;;  %v474_v2 = vld [vmem:[%s717_s1] sm:$0xff]  }
  0x27   :  { %419 = vmatprep.subr.bf16.mxu0 %v580_v0  ;;  %423 = vmatprep.mubr.msk.bf16.mxu0 %vm581_vm0, %v580_v0  ;;  %v63_v3 = vld [vmem:[#allocation2] sm:$0xff]  ;;  %v475_v4 = vld [vmem:[%s719_s3 + $0x38] sm:$0xff]   ;;  %v476_v6 = vld [vmem:[%s719_s3 + $0x30] sm:$0xff]   ;;  %vm88_vm1 = vcmask 261120   ;;  %vm358_vm2 = vcmask 130048  }
  0x28   :  { %427 = vmatprep.subr.bf16.mxu1 %v580_v0  ;;  %443 = vmatprep.mubr.msk.bf16.mxu1 %vm581_vm0, %v580_v0  ;;  %v64_v5 = vpack.c.bf16 %v63_v3, %v63_v3  ;;  %v477_v7 = vld [vmem:[%s719_s3 + $0x28] sm:$0xff]   ;;  %v478_v8 = vld [vmem:[%s719_s3 + $0x20] sm:$0xff]   ;;  %v479_v9 = vld [vmem:[%s719_s3 + $0x18] sm:$0xff]  }
  0x29   :  { %420 = vmatpush3.bf16.msra.mxu0 %v473_v1  ;;  %428 = vmatpush3.bf16.msra.mxu1 %v475_v4  ;;  %v480_v10 = vld [vmem:[%s719_s3 + $0x10] sm:$0xff]   ;;  %v481_v11 = vld [vmem:[%s719_s3 + $0x8] sm:$0xff]   ;;  %v482_v12 = vld [vmem:[%s719_s3] sm:$0xff]  }
  0x2a   :  { %421 = vmatprep.subr.bf16.mxu0 %v580_v0  ;;  %429 = vmatprep.subr.bf16.mxu1 %v580_v0  ;;  %v483_v13 = vld [vmem:[%s721_s5 + $0x38] sm:$0xff]   ;;  %v484_v14 = vld [vmem:[%s721_s5 + $0x30] sm:$0xff]   ;;  %v485_v15 = vld [vmem:[%s721_s5 + $0x28] sm:$0xff]  }
  0x2b   :  { %v486_v16 = vld [vmem:[%s721_s5 + $0x20] sm:$0xff]   ;;  %v487_v17 = vld [vmem:[%s721_s5 + $0x18] sm:$0xff]   ;;  %v488_v18 = vld [vmem:[%s721_s5 + $0x10] sm:$0xff]  }
  0x2c   :  { %v376_v19 = vld [vmem:[%s718_s2] ss:$0 sm:$0xff]  ;;  %v489_v27 = vld [vmem:[%s721_s5 + $0x8] sm:$0xff]   ;;  %s582_s2 = smov [#allocation8]  }
  0x2d   :  { %422 = vmatpush3.bf16.msra.mxu0 %v474_v2  ;;  %430 = vmatpush3.bf16.msra.mxu1 %v476_v6  ;;  %v490_v28 = vld [vmem:[%s721_s5] sm:$0xff]   ;;  %v380_v29 = vld [vmem:[#allocation5] ss:$0 sm:$0xff]  ;;  %v389_v37 = vld [vmem:[#allocation7] ss:$0 sm:$0xff]  ;;  %s366_s24 = sshll.u32 %s582_s2, 4  ;;  %s367_s24 = int_to_ptr.vmem [resolvable:$true] %s366_s24 }
  0x2e   :  { %447 = vmatprep.subr.bf16.mxu0 %v580_v0  ;;  %431 = vmatprep.subr.bf16.mxu1 %v580_v0  ;;  %s551_s5 = scalar_lea.vmem %s367_s24, 128  ;;  %p556_p2 = scmp.lt.s32.totalorder %s367_s24, %s367_s24 }
  0x2f   :  { %p552_p1 = scmp.ne.s32.totalorder %s367_s24, %s551_s5  ;;  %p557_p3 = scmp.lt.s32.totalorder %s551_s5, %s551_s5 }
  0x30   :  { %424 = vmatmul.mubr.msk.bf16.vlgmr.msra.gmra.mxu0 %vm88_vm1, %v64_v5 }
  0x31   :  { %463 = vmatprep.mubr.msk.bf16.mxu0 %vm581_vm0, %v580_v0  ;;  %432 = vmatpush3.bf16.msra.mxu1 %v477_v7  ;;  %p558_p4 = por %p557_p3, %p556_p2 }
  0x32   :  { %433 = vmatprep.subr.bf16.mxu1 %v580_v0  ;;  %448 = vmatpush3.bf16.msra.mxu0 %v483_v13 }
  0x33   :  { %449 = vmatprep.subr.bf16.mxu0 %v580_v0  ;;  %p559_p5 = pnand %p558_p4, %p552_p1 }
  0x35   :  { %434 = vmatpush3.bf16.msra.mxu1 %v478_v8 }
  0x36   :  { %435 = vmatprep.subr.bf16.mxu1 %v580_v0  ;;  %450 = vmatpush3.bf16.msra.mxu0 %v484_v14 }
  0x37   :  { %451 = vmatprep.subr.bf16.mxu0 %v580_v0 }
  0x39   :  { %436 = vmatpush3.bf16.msra.mxu1 %v479_v9 }
  0x3a   :  { %437 = vmatprep.subr.bf16.mxu1 %v580_v0  ;;  %452 = vmatpush3.bf16.msra.mxu0 %v485_v15 }
  0x3b   :  { %453 = vmatprep.subr.bf16.mxu0 %v580_v0 }
  0x3d   :  { %438 = vmatpush3.bf16.msra.mxu1 %v480_v10 }
  0x3e   :  { %439 = vmatprep.subr.bf16.mxu1 %v580_v0  ;;  %454 = vmatpush3.bf16.msra.mxu0 %v486_v16 }
  0x3f   :  { %455 = vmatprep.subr.bf16.mxu0 %v580_v0 }
  0x41   :  { %440 = vmatpush3.bf16.msra.mxu1 %v481_v11 }
  0x42   :  { %441 = vmatprep.subr.bf16.mxu1 %v580_v0  ;;  %456 = vmatpush3.bf16.msra.mxu0 %v487_v17 }
  0x43   :  { %457 = vmatprep.subr.bf16.mxu0 %v580_v0 }
  0x45   :  { %442 = vmatpush3.bf16.msra.mxu1 %v482_v12 }
  0x46   :  { %458 = vmatpush3.bf16.msra.mxu0 %v488_v18 }
  0x47   :  { %459 = vmatprep.subr.bf16.mxu0 %v580_v0 }
  0x4a   :  { %460 = vmatpush3.bf16.msra.mxu0 %v489_v27 }
  0x4b   :  { %461 = vmatprep.subr.bf16.mxu0 %v580_v0 }
  0x4e   :  { %462 = vmatpush3.bf16.msra.mxu0 %v490_v28 }
  0xf0   :  { %v126_v20 = vpop.f32.mrf.mxu0 }
  0xf1   :  { %v127_v21 = vadd.f32 %v376_v19, %v126_v20 }
  0xf2   :  { %v425_v22 = vpop.f32.mrf.mxu0 }
  0xf3   :  { %v132_v23 = vmax.f32 %v127_v21, 0.0 }
  0xf4   :  { %v129_v24 = vpop.f32.mrf.mxu0 }
  0xf5   :  { %v133_v25 = vpack.c.bf16 %v132_v23, %v132_v23 }
  0xf6   :  { %v426_v26 = vpop.f32.mrf.mxu0 }
  0xf7   :  { %444 = vmatmul.mubr.bf16.vlgmr.msra.gmra.mxu1 %v133_v25 }
 0x1b7   :  { %v239_v30 = vpop.f32.mrf.mxu1 }
 0x1b8   :  { %v240_v31 = vadd.f32 %v380_v29, %v239_v30 }
 0x1b9   :  { %v445_v32 = vpop.f32.mrf.mxu1 }
 0x1ba   :  { %v245_v33 = vmax.f32 %v240_v31, 0.0 }
 0x1bb   :  { %v242_v34 = vpop.f32.mrf.mxu1 }
 0x1bc   :  { %v246_v35 = vpack.c.bf16 %v245_v33, %v245_v33 }
 0x1bd   :  { %v446_v36 = vpop.f32.mrf.mxu1 }
 0x1be   :  { %464 = vmatmul.mubr.bf16.vlgmr.msra.gmra.mxu0 %v246_v35 }
 0x27e   :  { %v352_v38 = vpop.f32.mrf.mxu0 }
 0x27f   :  { %v353_v39 = vadd.f32 %v389_v37, %v352_v38 }
 0x280   :  { %v465_v40 = vpop.f32.mrf.mxu0 }
 0x281   :  { %359 = vst.msk [vmem:[#allocation8] sm:$0xff] %vm358_vm2, %v353_v39 }
 0x282   :  { %v355_v41 = vpop.f32.mrf.mxu0 }
 0x283   :  { %562 = shalt.err (!%p559_p5)
}
 0x284   :  { %369 = dma.vmem_to_hbm [thread:$0]  %s367_s24, 128, %s723_s7, [#allocation4]   ;;  %v466_v42 = vpop.f32.mrf.mxu0 }
 0x285   :  { %575 = dma.done.wait [#allocation4], 128  }
 0x286   :  { %576 = vsyncadd [#allocation4], 4294967168 }
 0x287   :  { %373 = vsyncpa [#allocation3], 1 }
 0x288   :  { %374 = vsyncpa [#allocation6], 1 }
 0x289   :  { %375 = vsyncpa [#allocation4], 1 }

</bundles_post_ra>
